<compile_context>
chip_gen: v5e
topology: v5e:2x2
jax: 0.10.0
libtpu: 0.0.40
codegen_flags: <defaults>
</compile_context>

<pallas_src>
import math

import jax
import jax.numpy as jnp
from jax.experimental import pallas as pl
from jax.experimental.pallas import tpu as pltpu

_LANE = 128


def _round_up(a: int, b: int) -> int:
    return ((a + b - 1) // b) * b


def _cdiv(a: int, b: int) -> int:
    return -(-a // b)


def _vmem_budget_bytes() -> int:
    """Total byte budget for the pipelined tiles (2x in + 2x out)."""
    cap = 64 << 20  # conservative default (v7x has 64 MiB VMEM per TensorCore)
    try:
        cap = int(pltpu.get_tpu_info().vmem_capacity_bytes)
    except Exception:
        pass
    # Leave ample headroom for compiler scratch; 32 MiB of tile buffers is already
    # deep into the flat part of the HBM-roofline curve for elementwise kernels.
    return min(cap // 2, 32 << 20)


def _layerscale_kernel(x_ref, gamma_ref, o_ref):
    # x_ref:     (TILE_ROWS, D2) tile of the (possibly lane-densified) input
    # gamma_ref: (1, D2) full gamma row in f32, resident across all grid steps
    # o_ref:     (TILE_ROWS, D2) output tile
    x = x_ref[...].astype(jnp.float32)
    o_ref[...] = (x * gamma_ref[...]).astype(o_ref.dtype)


def layer_scale(x: jax.Array, gamma: jax.Array) -> jax.Array:
    """Computes x * gamma with gamma broadcast along the last axis of x."""
    orig_shape = x.shape
    dim = orig_shape[-1]
    assert gamma.shape == (dim,), (gamma.shape, dim)

    dtype = x.dtype
    itemsize = jnp.dtype(dtype).itemsize

    # Flatten all leading axes into a "rows" axis: (R, D).
    x2d = x.reshape(-1, dim)
    rows = x2d.shape[0]

    # --- Lane densification: present a last dim that is a multiple of 128 lanes
    # when D < 128 (avoids masked partial stores). k rows of width D are folded
    # into one row of width k*D; gamma is tiled k times to match.
    if dim < _LANE:
        k = _LANE // math.gcd(dim, _LANE)
    else:
        k = 1
    d2 = dim * k

    # Sublane multiple for the packed dtype (8 for 32-bit, 16 for 16-bit, 32 for 8-bit).
    sublane = 8 * max(1, 4 // itemsize)

    # Densified (unpadded) row count.
    r_dense = _cdiv(rows, k)

    # --- Tile rows from the VMEM budget: 2x input + 2x output tiles live at once.
    budget = _vmem_budget_bytes()
    row_bytes = d2 * itemsize
    tile_rows = (budget // 4 // row_bytes) // sublane * sublane
    tile_rows = max(sublane, tile_rows)
    tile_rows = min(tile_rows, _round_up(r_dense, sublane))

    # Ensure at least 2 grid steps when there is enough work (megacore sharding on v7x).
    if _cdiv(r_dense, tile_rows) < 2 and r_dense > sublane:
        tile_rows = max(sublane, _round_up(_cdiv(r_dense, 2), sublane))

    num_tiles = _cdiv(r_dense, tile_rows)
    r_dense_pad = num_tiles * tile_rows
    rows_pad = r_dense_pad * k

    # Pad rows (zeros) so every tile is full; padded rows are sliced off afterwards.
    if rows_pad != rows:
        x2d = jnp.pad(x2d, ((0, rows_pad - rows), (0, 0)))
    x_dense = x2d.reshape(r_dense_pad, d2)

    gamma_dense = jnp.tile(gamma.astype(jnp.float32), k).reshape(1, d2)

    # Scoped VMEM limit sized to the actual tiles (+ gamma + headroom); well under the
    # 64 MiB physical VMEM of a v7x TensorCore.
    tile_bytes = tile_rows * row_bytes
    vmem_limit = min(int(4 * tile_bytes + d2 * 4 + (4 << 20)), 48 << 20)

    out = pl.pallas_call(
        _layerscale_kernel,
        out_shape=jax.ShapeDtypeStruct((r_dense_pad, d2), dtype),
        grid_spec=pltpu.PrefetchScalarGridSpec(
            num_scalar_prefetch=0,
            grid=(num_tiles,),
            in_specs=[
                pl.BlockSpec((tile_rows, d2), lambda i: (i, 0)),
                pl.BlockSpec((1, d2), lambda i: (0, 0)),  # resident gamma
            ],
            out_specs=pl.BlockSpec((tile_rows, d2), lambda i: (i, 0)),
        ),
        compiler_params=pltpu.CompilerParams(
            dimension_semantics=("parallel",),
            vmem_limit_bytes=vmem_limit,
        ),
    )(x_dense, gamma_dense)

    out = out.reshape(rows_pad, dim)
    if rows_pad != rows:
        out = out[:rows]
    return out.reshape(orig_shape)


if __name__ == "__main__":
    key = jax.random.PRNGKey(0)

    # Small shapes consistent with the module: x of shape (batch, seq, dim).
    B, N, D = 2, 8, 32
    init_values = 1e-05

    x = jax.random.normal(key, (B, N, D), dtype=jnp.float32)
    # Deterministic parameter init, matching nn.Parameter(init_values * torch.ones(dim)).
    gamma = init_values * jnp.ones((D,), dtype=jnp.float32)

    out = jax.block_until_ready(layer_scale(x, gamma))
    ref = x * gamma
    assert out.shape == x.shape and out.dtype == x.dtype
    assert jnp.allclose(out, ref, atol=0, rtol=0), "mismatch vs reference"

    # Awkward row count (exercises the pad-and-slice path instead of a full-extent block).
    x2 = jax.random.normal(jax.random.PRNGKey(1), (3, 5, D), dtype=jnp.float32)
    out2 = jax.block_until_ready(layer_scale(x2, gamma))
    assert jnp.allclose(out2, x2 * gamma, atol=0, rtol=0), "mismatch (awkward rows)"

    # TODO(synk): the PyTorch `inplace=True` (x.mul_) variant has no in-place JAX
    # equivalent; this functional version covers the default forward semantics.

    print("KERNEL_OK")
</pallas_src>

<mosaic_0001>
module attributes {stable_mosaic.version = 11 : i64} {
  func.func @_layerscale_kernel(%arg0: i32, %arg1: memref<8x128xf32, #tpu.memory_space<vmem>>, %arg2: memref<1x128xf32, #tpu.memory_space<vmem>>, %arg3: memref<8x128xf32, #tpu.memory_space<vmem>>) attributes {dimension_semantics = [#tpu.dimension_semantics<parallel>], iteration_bounds = array<i64: 1>, scalar_prefetch = 0 : i64, scratch_operands = 0 : i64, tpu.core_type = #tpu.core_type<tc>, window_params = [{transform_indices = @transform_0, window_bounds = array<i64: 8, 128>}, {pipeline_mode = #tpu.pipeline_mode<synchronous>, transform_indices = @transform_1, window_bounds = array<i64: 1, 128>}, {transform_indices = @transform_2, window_bounds = array<i64: 8, 128>}]} {
    %c0 = arith.constant 0 : index
    %c0_0 = arith.constant 0 : index
    %0 = vector.load %arg1[%c0, %c0_0] : memref<8x128xf32, #tpu.memory_space<vmem>>, vector<8x128xf32>
    %c0_1 = arith.constant 0 : index
    %c0_2 = arith.constant 0 : index
    %1 = vector.load %arg2[%c0_1, %c0_2] : memref<1x128xf32, #tpu.memory_space<vmem>>, vector<1x128xf32>
    %2 = vector.broadcast %1 : vector<1x128xf32> to vector<8x128xf32>
    %3 = arith.mulf %0, %2 : vector<8x128xf32>
    %c0_3 = arith.constant 0 : index
    %c0_4 = arith.constant 0 : index
    %4 = vector.load %arg3[%c0_3, %c0_4] : memref<8x128xf32, #tpu.memory_space<vmem>>, vector<8x128xf32>
    tpu.vector_store %arg3[%c0_3, %c0_4], %3 {strides = array<i32>} : memref<8x128xf32, #tpu.memory_space<vmem>>, vector<8x128xf32>,
    return
  }
  func.func @transform_0(%arg0: i32) -> (i32, i32) {
    %c0_i32 = arith.constant 0 : i32
    %c0_i32_0 = arith.constant 0 : i32
    return %arg0, %c0_i32 : i32, i32
  }
  func.func @transform_1(%arg0: i32) -> (i32, i32) {
    %c0_i32 = arith.constant 0 : i32
    %c0_i32_0 = arith.constant 0 : i32
    %c0_i32_1 = arith.constant 0 : i32
    return %c0_i32, %c0_i32_0 : i32, i32
  }
  func.func @transform_2(%arg0: i32) -> (i32, i32) {
    %c0_i32 = arith.constant 0 : i32
    %c0_i32_0 = arith.constant 0 : i32
    return %arg0, %c0_i32 : i32, i32
  }
}

</mosaic_0001>

<bundles_post_ra>
// kernel: tpu_custom_call.1
= control target key start
LH: loop header
LB: loop body
LE: loop exit
PB: predicated region body
PF: predicated region fallthrough
CT: control target
= control target key end

     0   :  { %7 = vsyncpa [#allocation3], 0  ;;  %s174_s0 = inlined_call_operand.hbm [shape: f32[8,128], index: 0, kind: input, shape index: {}]   ;;  %s175_s1 = inlined_call_operand.hbm [shape: f32[1,128], index: 1, kind: input, shape index: {}]   ;;  %s176_s2 = inlined_call_operand.hbm [shape: f32[8,128], index: 2, kind: output, shape index: {}]  }
   0x1   :  { %8 = vsyncpa [#allocation6], 0 }
   0x2   :  { %9 = vsyncpa [#allocation4], 0  ;;  %s15_s11 = sshll.u32 %s174_s0, 4  ;;  %s147_s12 = smov [#allocation2]   ;;  %s16_s11 = int_to_ptr.hbm [resolvable:$true] %s15_s11 }
   0x3   :  { %s17_s13 = sshll.u32 %s147_s12, 4  ;;  %s26_s16 = sshll.u32 %s175_s1, 4  ;;  %s18_s13 = int_to_ptr.vmem [resolvable:$true] %s17_s13  ;;  %s27_s16 = int_to_ptr.hbm [resolvable:$true] %s26_s16 }
   0x4   :  { %20 = dma.hbm_to_vmem [thread:$0]  %s16_s11, 128, %s18_s13, [#allocation3]  }
   0x5   :  { %s148_s17 = smov [#allocation5]  }
   0x6   :  { %s28_s18 = sshll.u32 %s148_s17, 4  ;;  %s29_s18 = int_to_ptr.vmem [resolvable:$true] %s28_s18 }
   0x7   :  { %31 = dma.hbm_to_vmem [thread:$0]  %s27_s16, 16, %s29_s18, [#allocation6]  }
   0x8   :  { %141 = dma.done.wait [#allocation3], 128  }
   0x9   :  { %142 = vsyncadd [#allocation3], 4294967168 }
   0xa   :  { %143 = dma.done.wait [#allocation6], 16  }
   0xb   :  { %144 = vsyncadd [#allocation6], 4294967280  ;;  %s149_s19 = smov [#allocation7]   ;;  %s54_s22 = sshll.u32 %s176_s2, 4  ;;  %v40_v0 = vld [vmem:[#allocation2] sm:$0xff]  ;;  %s55_s22 = int_to_ptr.hbm [resolvable:$true] %s54_s22 }
   0xc   :  { %s52_s0 = sshll.u32 %s149_s19, 4  ;;  %v68_v1 = vld [vmem:[#allocation5] ss:$0 sm:$0xff]  ;;  %s53_s0 = int_to_ptr.vmem [resolvable:$true] %s52_s0 }
   0xd   :  { %v45_v2 = vmul.f32 %v68_v1, %v40_v0 }
   0xf   :  { %46 = vst [vmem:[#allocation7] sm:$0xff] %v45_v2 }
  0x10   :  { %57 = dma.vmem_to_hbm [thread:$0]  %s53_s0, 128, %s55_s22, [#allocation4]  }
  0x11   :  { %145 = dma.done.wait [#allocation4], 128  }
  0x12   :  { %146 = vsyncadd [#allocation4], 4294967168 }
  0x13   :  { %62 = vsyncpa [#allocation3], 1 }
  0x14   :  { %63 = vsyncpa [#allocation6], 1 }
  0x15   :  { %64 = vsyncpa [#allocation4], 1 }

</bundles_post_ra>
